<compile_context>
chip_gen: v7x
topology: tpu7x:2x2x1
jax: 0.10.0
libtpu: 0.0.40
codegen_flags: <defaults>
</compile_context>

<pallas_src>
import jax
import jax.numpy as jnp
from jax.experimental import pallas as pl
from jax.experimental.pallas import tpu as pltpu

H_IN, H_HID, H_OUT = 8, 4, 2
LANE = 128
TM = 64  # batch sublane-tiles per grid step -> 64*128 = 8192 batch columns/step


def mlp_kernel(w1_ref, b1_ref, w2_ref, b2_ref, x_ref, o_ref):
    """One batch tile.

    x_ref : (8, tm, 128) f32 VMEM  -- batch packed dense on (sublane, lane)
    o_ref : (2, tm, 128) f32 VMEM
    w1_ref: (4, 8)  f32 SMEM   (PyTorch layout: [out, in])
    b1_ref: (4,)    f32 SMEM
    w2_ref: (2, 4)  f32 SMEM
    b2_ref: (2,)    f32 SMEM
    """
    # ---- Layer 1: h_j = tanh(b1[j] + sum_k w1[j,k] * x_k) -------------------
    # Unrolled scalar-broadcast FMAs on dense (tm,128) tiles (VPU), no MXU.
    xk = x_ref[0]                                   # (tm, 128)
    h = [xk * w1_ref[j, 0] for j in range(H_HID)]
    for k in range(1, H_IN):
        xk = x_ref[k]
        for j in range(H_HID):
            h[j] = h[j] + xk * w1_ref[j, k]
    h = [jnp.tanh(h[j] + b1_ref[j]) for j in range(H_HID)]   # tanh -> EUP

    # ---- Layer 2: y_i = tanh(b2[i] + sum_j w2[i,j] * h_j) -------------------
    for i in range(H_OUT):
        y = h[0] * w2_ref[i, 0]
        for j in range(1, H_HID):
            y = y + h[j] * w2_ref[i, j]
        o_ref[i] = jnp.tanh(y + b2_ref[i]).astype(o_ref.dtype)  # lane-dense store


def _round_up(n, m):
    return (n + m - 1) // m * m


def simple_mlp_forward(x, w1, b1, w2, b2):
    """x: (B, 8) f32; w1: (4, 8); b1: (4,); w2: (2, 4); b2: (2,). Returns (B, 2)."""
    B = x.shape[0]
    nm = _round_up(B, LANE) // LANE            # 128-wide batch lane-tiles needed
    if nm <= TM:                               # single grid step, full-array block
        tm = nm
        b_pad = nm * LANE
    else:                                      # tile the batch; tm multiple of 8
        tm = TM
        b_pad = _round_up(B, tm * LANE)
    grid = (b_pad // (tm * LANE),)

    # One-time layout plumbing OUTSIDE the kernel (not per grid step):
    # (B,8) -> pad batch -> (8, b_pad) -> (8, b_pad/128, 128).
    x_t = jnp.pad(x, ((0, b_pad - B), (0, 0))).T
    x_t = x_t.reshape(H_IN, b_pad // LANE, LANE)

    # Params: SMEM-resident scalars, constant index map (no per-step re-DMA).
    smem = lambda a: pl.BlockSpec(a.shape, lambda i, _nd=a.ndim: (0,) * _nd,
                                  memory_space=pltpu.SMEM)
    cost = pl.CostEstimate(
        flops=2 * B * (H_IN * H_HID + H_HID * H_OUT),
        transcendentals=B * (H_HID + H_OUT),
        bytes_accessed=4 * B * (H_IN + H_OUT),
    )
    # TODO(synk): optional bf16 streaming of x/out would ~halve HBM bytes on
    # v6e/v7x; kept f32 end-to-end to match the reference exactly.
    out_t = pl.pallas_call(
        mlp_kernel,
        grid=grid,
        out_shape=jax.ShapeDtypeStruct((H_OUT, b_pad // LANE, LANE), x.dtype),
        in_specs=[smem(w1), smem(b1), smem(w2), smem(b2),
                  pl.BlockSpec((H_IN, tm, LANE), lambda i: (0, i, 0),
                               memory_space=pltpu.VMEM)],
        out_specs=pl.BlockSpec((H_OUT, tm, LANE), lambda i: (0, i, 0),
                               memory_space=pltpu.VMEM),
        compiler_params=pltpu.CompilerParams(
            dimension_semantics=("parallel",)),
        cost_estimate=cost,
    )(w1, b1, w2, b2, x_t)

    # Back to PyTorch layout; drop the padded batch columns.
    return out_t.reshape(H_OUT, b_pad)[:, :B].T


def init_params(key):
    # Deterministic init mimicking nn.Linear default (uniform +/- 1/sqrt(fan_in)),
    # PyTorch weight layout (out_features, in_features).
    k1, k2, k3, k4 = jax.random.split(key, 4)
    bound1 = 1.0 / jnp.sqrt(8.0)
    bound2 = 1.0 / jnp.sqrt(4.0)
    w1 = jax.random.uniform(k1, (4, 8), jnp.float32, -bound1, bound1)
    b1 = jax.random.uniform(k2, (4,), jnp.float32, -bound1, bound1)
    w2 = jax.random.uniform(k3, (2, 4), jnp.float32, -bound2, bound2)
    b2 = jax.random.uniform(k4, (2,), jnp.float32, -bound2, bound2)
    return w1, b1, w2, b2


if __name__ == "__main__":
    key = jax.random.PRNGKey(0)
    kx, kp = jax.random.split(key)
    B = 8
    x = jax.random.normal(kx, (B, 8), jnp.float32)
    w1, b1, w2, b2 = init_params(kp)

    out = jax.block_until_ready(simple_mlp_forward(x, w1, b1, w2, b2))

    # Pure-JAX reference check (PyTorch semantics: x @ W.T + b).
    ref = jnp.tanh(jnp.tanh(x @ w1.T + b1) @ w2.T + b2)
    assert out.shape == (B, 2)
    assert jnp.allclose(out, ref, atol=1e-5), "mismatch vs reference"
    print("KERNEL_OK")
</pallas_src>

<mosaic_0001>
module attributes {stable_mosaic.version = 11 : i64} {
  func.func @mlp_kernel(%arg0: i32, %arg1: memref<4x8xf32, #tpu.memory_space<smem>>, %arg2: memref<4xf32, #tpu.memory_space<smem>>, %arg3: memref<2x4xf32, #tpu.memory_space<smem>>, %arg4: memref<2xf32, #tpu.memory_space<smem>>, %arg5: memref<8x1x128xf32, #tpu.memory_space<vmem>>, %arg6: memref<2x1x128xf32, #tpu.memory_space<vmem>>) attributes {dimension_semantics = [#tpu.dimension_semantics<parallel>], iteration_bounds = array<i64: 1>, scalar_prefetch = 0 : i64, scratch_operands = 0 : i64, tpu.core_type = #tpu.core_type<tc>, window_params = [{transform_indices = @transform_0, window_bounds = array<i64: 4, 8>}, {transform_indices = @transform_1, window_bounds = array<i64: 4>}, {transform_indices = @transform_2, window_bounds = array<i64: 2, 4>}, {transform_indices = @transform_3, window_bounds = array<i64: 2>}, {transform_indices = @transform_4, window_bounds = array<i64: 8, 1, 128>}, {transform_indices = @transform_5, window_bounds = array<i64: 2, 1, 128>}]} {
    %c0 = arith.constant 0 : index
    %c0_0 = arith.constant 0 : index
    %c0_1 = arith.constant 0 : index
    %0 = vector.load %arg5[%c0, %c0_0, %c0_1] : memref<8x1x128xf32, #tpu.memory_space<vmem>>, vector<1x1x128xf32>
    %1 = vector.shape_cast %0 : vector<1x1x128xf32> to vector<1x128xf32>
    %c0_2 = arith.constant 0 : index
    %c0_3 = arith.constant 0 : index
    %2 = memref.load %arg1[%c0_2, %c0_3] : memref<4x8xf32, #tpu.memory_space<smem>>
    %3 = vector.broadcast %2 : f32 to vector<1x128xf32>
    %4 = arith.mulf %1, %3 : vector<1x128xf32>
    %c1 = arith.constant 1 : index
    %c0_4 = arith.constant 0 : index
    %5 = memref.load %arg1[%c1, %c0_4] : memref<4x8xf32, #tpu.memory_space<smem>>
    %6 = vector.broadcast %5 : f32 to vector<1x128xf32>
    %7 = arith.mulf %1, %6 : vector<1x128xf32>
    %c2 = arith.constant 2 : index
    %c0_5 = arith.constant 0 : index
    %8 = memref.load %arg1[%c2, %c0_5] : memref<4x8xf32, #tpu.memory_space<smem>>
    %9 = vector.broadcast %8 : f32 to vector<1x128xf32>
    %10 = arith.mulf %1, %9 : vector<1x128xf32>
    %c3 = arith.constant 3 : index
    %c0_6 = arith.constant 0 : index
    %11 = memref.load %arg1[%c3, %c0_6] : memref<4x8xf32, #tpu.memory_space<smem>>
    %12 = vector.broadcast %11 : f32 to vector<1x128xf32>
    %13 = arith.mulf %1, %12 : vector<1x128xf32>
    %c1_7 = arith.constant 1 : index
    %c0_8 = arith.constant 0 : index
    %c0_9 = arith.constant 0 : index
    %14 = vector.load %arg5[%c1_7, %c0_8, %c0_9] : memref<8x1x128xf32, #tpu.memory_space<vmem>>, vector<1x1x128xf32>
    %15 = vector.shape_cast %14 : vector<1x1x128xf32> to vector<1x128xf32>
    %c0_10 = arith.constant 0 : index
    %c1_11 = arith.constant 1 : index
    %16 = memref.load %arg1[%c0_10, %c1_11] : memref<4x8xf32, #tpu.memory_space<smem>>
    %17 = vector.broadcast %16 : f32 to vector<1x128xf32>
    %18 = arith.mulf %15, %17 : vector<1x128xf32>
    %19 = arith.addf %4, %18 : vector<1x128xf32>
    %c1_12 = arith.constant 1 : index
    %c1_13 = arith.constant 1 : index
    %20 = memref.load %arg1[%c1_12, %c1_13] : memref<4x8xf32, #tpu.memory_space<smem>>
    %21 = vector.broadcast %20 : f32 to vector<1x128xf32>
    %22 = arith.mulf %15, %21 : vector<1x128xf32>
    %23 = arith.addf %7, %22 : vector<1x128xf32>
    %c2_14 = arith.constant 2 : index
    %c1_15 = arith.constant 1 : index
    %24 = memref.load %arg1[%c2_14, %c1_15] : memref<4x8xf32, #tpu.memory_space<smem>>
    %25 = vector.broadcast %24 : f32 to vector<1x128xf32>
    %26 = arith.mulf %15, %25 : vector<1x128xf32>
    %27 = arith.addf %10, %26 : vector<1x128xf32>
    %c3_16 = arith.constant 3 : index
    %c1_17 = arith.constant 1 : index
    %28 = memref.load %arg1[%c3_16, %c1_17] : memref<4x8xf32, #tpu.memory_space<smem>>
    %29 = vector.broadcast %28 : f32 to vector<1x128xf32>
    %30 = arith.mulf %15, %29 : vector<1x128xf32>
    %31 = arith.addf %13, %30 : vector<1x128xf32>
    %c2_18 = arith.constant 2 : index
    %c0_19 = arith.constant 0 : index
    %c0_20 = arith.constant 0 : index
    %32 = vector.load %arg5[%c2_18, %c0_19, %c0_20] : memref<8x1x128xf32, #tpu.memory_space<vmem>>, vector<1x1x128xf32>
    %33 = vector.shape_cast %32 : vector<1x1x128xf32> to vector<1x128xf32>
    %c0_21 = arith.constant 0 : index
    %c2_22 = arith.constant 2 : index
    %34 = memref.load %arg1[%c0_21, %c2_22] : memref<4x8xf32, #tpu.memory_space<smem>>
    %35 = vector.broadcast %34 : f32 to vector<1x128xf32>
    %36 = arith.mulf %33, %35 : vector<1x128xf32>
    %37 = arith.addf %19, %36 : vector<1x128xf32>
    %c1_23 = arith.constant 1 : index
    %c2_24 = arith.constant 2 : index
    %38 = memref.load %arg1[%c1_23, %c2_24] : memref<4x8xf32, #tpu.memory_space<smem>>
    %39 = vector.broadcast %38 : f32 to vector<1x128xf32>
    %40 = arith.mulf %33, %39 : vector<1x128xf32>
    %41 = arith.addf %23, %40 : vector<1x128xf32>
    %c2_25 = arith.constant 2 : index
    %c2_26 = arith.constant 2 : index
    %42 = memref.load %arg1[%c2_25, %c2_26] : memref<4x8xf32, #tpu.memory_space<smem>>
    %43 = vector.broadcast %42 : f32 to vector<1x128xf32>
    %44 = arith.mulf %33, %43 : vector<1x128xf32>
    %45 = arith.addf %27, %44 : vector<1x128xf32>
    %c3_27 = arith.constant 3 : index
    %c2_28 = arith.constant 2 : index
    %46 = memref.load %arg1[%c3_27, %c2_28] : memref<4x8xf32, #tpu.memory_space<smem>>
    %47 = vector.broadcast %46 : f32 to vector<1x128xf32>
    %48 = arith.mulf %33, %47 : vector<1x128xf32>
    %49 = arith.addf %31, %48 : vector<1x128xf32>
    %c3_29 = arith.constant 3 : index
    %c0_30 = arith.constant 0 : index
    %c0_31 = arith.constant 0 : index
    %50 = vector.load %arg5[%c3_29, %c0_30, %c0_31] : memref<8x1x128xf32, #tpu.memory_space<vmem>>, vector<1x1x128xf32>
    %51 = vector.shape_cast %50 : vector<1x1x128xf32> to vector<1x128xf32>
    %c0_32 = arith.constant 0 : index
    %c3_33 = arith.constant 3 : index
    %52 = memref.load %arg1[%c0_32, %c3_33] : memref<4x8xf32, #tpu.memory_space<smem>>
    %53 = vector.broadcast %52 : f32 to vector<1x128xf32>
    %54 = arith.mulf %51, %53 : vector<1x128xf32>
    %55 = arith.addf %37, %54 : vector<1x128xf32>
    %c1_34 = arith.constant 1 : index
    %c3_35 = arith.constant 3 : index
    %56 = memref.load %arg1[%c1_34, %c3_35] : memref<4x8xf32, #tpu.memory_space<smem>>
    %57 = vector.broadcast %56 : f32 to vector<1x128xf32>
    %58 = arith.mulf %51, %57 : vector<1x128xf32>
    %59 = arith.addf %41, %58 : vector<1x128xf32>
    %c2_36 = arith.constant 2 : index
    %c3_37 = arith.constant 3 : index
    %60 = memref.load %arg1[%c2_36, %c3_37] : memref<4x8xf32, #tpu.memory_space<smem>>
    %61 = vector.broadcast %60 : f32 to vector<1x128xf32>
    %62 = arith.mulf %51, %61 : vector<1x128xf32>
    %63 = arith.addf %45, %62 : vector<1x128xf32>
    %c3_38 = arith.constant 3 : index
    %c3_39 = arith.constant 3 : index
    %64 = memref.load %arg1[%c3_38, %c3_39] : memref<4x8xf32, #tpu.memory_space<smem>>
    %65 = vector.broadcast %64 : f32 to vector<1x128xf32>
    %66 = arith.mulf %51, %65 : vector<1x128xf32>
    %67 = arith.addf %49, %66 : vector<1x128xf32>
    %c4 = arith.constant 4 : index
    %c0_40 = arith.constant 0 : index
    %c0_41 = arith.constant 0 : index
    %68 = vector.load %arg5[%c4, %c0_40, %c0_41] : memref<8x1x128xf32, #tpu.memory_space<vmem>>, vector<1x1x128xf32>
    %69 = vector.shape_cast %68 : vector<1x1x128xf32> to vector<1x128xf32>
    %c0_42 = arith.constant 0 : index
    %c4_43 = arith.constant 4 : index
    %70 = memref.load %arg1[%c0_42, %c4_43] : memref<4x8xf32, #tpu.memory_space<smem>>
    %71 = vector.broadcast %70 : f32 to vector<1x128xf32>
    %72 = arith.mulf %69, %71 : vector<1x128xf32>
    %73 = arith.addf %55, %72 : vector<1x128xf32>
    %c1_44 = arith.constant 1 : index
    %c4_45 = arith.constant 4 : index
    %74 = memref.load %arg1[%c1_44, %c4_45] : memref<4x8xf32, #tpu.memory_space<smem>>
    %75 = vector.broadcast %74 : f32 to vector<1x128xf32>
    %76 = arith.mulf %69, %75 : vector<1x128xf32>
    %77 = arith.addf %59, %76 : vector<1x128xf32>
    %c2_46 = arith.constant 2 : index
    %c4_47 = arith.constant 4 : index
    %78 = memref.load %arg1[%c2_46, %c4_47] : memref<4x8xf32, #tpu.memory_space<smem>>
    %79 = vector.broadcast %78 : f32 to vector<1x128xf32>
    %80 = arith.mulf %69, %79 : vector<1x128xf32>
    %81 = arith.addf %63, %80 : vector<1x128xf32>
    %c3_48 = arith.constant 3 : index
    %c4_49 = arith.constant 4 : index
    %82 = memref.load %arg1[%c3_48, %c4_49] : memref<4x8xf32, #tpu.memory_space<smem>>
    %83 = vector.broadcast %82 : f32 to vector<1x128xf32>
    %84 = arith.mulf %69, %83 : vector<1x128xf32>
    %85 = arith.addf %67, %84 : vector<1x128xf32>
    %c5 = arith.constant 5 : index
    %c0_50 = arith.constant 0 : index
    %c0_51 = arith.constant 0 : index
    %86 = vector.load %arg5[%c5, %c0_50, %c0_51] : memref<8x1x128xf32, #tpu.memory_space<vmem>>, vector<1x1x128xf32>
    %87 = vector.shape_cast %86 : vector<1x1x128xf32> to vector<1x128xf32>
    %c0_52 = arith.constant 0 : index
    %c5_53 = arith.constant 5 : index
    %88 = memref.load %arg1[%c0_52, %c5_53] : memref<4x8xf32, #tpu.memory_space<smem>>
    %89 = vector.broadcast %88 : f32 to vector<1x128xf32>
    %90 = arith.mulf %87, %89 : vector<1x128xf32>
    %91 = arith.addf %73, %90 : vector<1x128xf32>
    %c1_54 = arith.constant 1 : index
    %c5_55 = arith.constant 5 : index
    %92 = memref.load %arg1[%c1_54, %c5_55] : memref<4x8xf32, #tpu.memory_space<smem>>
    %93 = vector.broadcast %92 : f32 to vector<1x128xf32>
    %94 = arith.mulf %87, %93 : vector<1x128xf32>
    %95 = arith.addf %77, %94 : vector<1x128xf32>
    %c2_56 = arith.constant 2 : index
    %c5_57 = arith.constant 5 : index
    %96 = memref.load %arg1[%c2_56, %c5_57] : memref<4x8xf32, #tpu.memory_space<smem>>
    %97 = vector.broadcast %96 : f32 to vector<1x128xf32>
    %98 = arith.mulf %87, %97 : vector<1x128xf32>
    %99 = arith.addf %81, %98 : vector<1x128xf32>
    %c3_58 = arith.constant 3 : index
    %c5_59 = arith.constant 5 : index
    %100 = memref.load %arg1[%c3_58, %c5_59] : memref<4x8xf32, #tpu.memory_space<smem>>
    %101 = vector.broadcast %100 : f32 to vector<1x128xf32>
    %102 = arith.mulf %87, %101 : vector<1x128xf32>
    %103 = arith.addf %85, %102 : vector<1x128xf32>
    %c6 = arith.constant 6 : index
    %c0_60 = arith.constant 0 : index
    %c0_61 = arith.constant 0 : index
    %104 = vector.load %arg5[%c6, %c0_60, %c0_61] : memref<8x1x128xf32, #tpu.memory_space<vmem>>, vector<1x1x128xf32>
    %105 = vector.shape_cast %104 : vector<1x1x128xf32> to vector<1x128xf32>
    %c0_62 = arith.constant 0 : index
    %c6_63 = arith.constant 6 : index
    %106 = memref.load %arg1[%c0_62, %c6_63] : memref<4x8xf32, #tpu.memory_space<smem>>
    %107 = vector.broadcast %106 : f32 to vector<1x128xf32>
    %108 = arith.mulf %105, %107 : vector<1x128xf32>
    %109 = arith.addf %91, %108 : vector<1x128xf32>
    %c1_64 = arith.constant 1 : index
    %c6_65 = arith.constant 6 : index
    %110 = memref.load %arg1[%c1_64, %c6_65] : memref<4x8xf32, #tpu.memory_space<smem>>
    %111 = vector.broadcast %110 : f32 to vector<1x128xf32>
    %112 = arith.mulf %105, %111 : vector<1x128xf32>
    %113 = arith.addf %95, %112 : vector<1x128xf32>
    %c2_66 = arith.constant 2 : index
    %c6_67 = arith.constant 6 : index
    %114 = memref.load %arg1[%c2_66, %c6_67] : memref<4x8xf32, #tpu.memory_space<smem>>
    %115 = vector.broadcast %114 : f32 to vector<1x128xf32>
    %116 = arith.mulf %105, %115 : vector<1x128xf32>
    %117 = arith.addf %99, %116 : vector<1x128xf32>
    %c3_68 = arith.constant 3 : index
    %c6_69 = arith.constant 6 : index
    %118 = memref.load %arg1[%c3_68, %c6_69] : memref<4x8xf32, #tpu.memory_space<smem>>
    %119 = vector.broadcast %118 : f32 to vector<1x128xf32>
    %120 = arith.mulf %105, %119 : vector<1x128xf32>
    %121 = arith.addf %103, %120 : vector<1x128xf32>
    %c7 = arith.constant 7 : index
    %c0_70 = arith.constant 0 : index
    %c0_71 = arith.constant 0 : index
    %122 = vector.load %arg5[%c7, %c0_70, %c0_71] : memref<8x1x128xf32, #tpu.memory_space<vmem>>, vector<1x1x128xf32>
    %123 = vector.shape_cast %122 : vector<1x1x128xf32> to vector<1x128xf32>
    %c0_72 = arith.constant 0 : index
    %c7_73 = arith.constant 7 : index
    %124 = memref.load %arg1[%c0_72, %c7_73] : memref<4x8xf32, #tpu.memory_space<smem>>
    %125 = vector.broadcast %124 : f32 to vector<1x128xf32>
    %126 = arith.mulf %123, %125 : vector<1x128xf32>
    %127 = arith.addf %109, %126 : vector<1x128xf32>
    %c1_74 = arith.constant 1 : index
    %c7_75 = arith.constant 7 : index
    %128 = memref.load %arg1[%c1_74, %c7_75] : memref<4x8xf32, #tpu.memory_space<smem>>
    %129 = vector.broadcast %128 : f32 to vector<1x128xf32>
    %130 = arith.mulf %123, %129 : vector<1x128xf32>
    %131 = arith.addf %113, %130 : vector<1x128xf32>
    %c2_76 = arith.constant 2 : index
    %c7_77 = arith.constant 7 : index
    %132 = memref.load %arg1[%c2_76, %c7_77] : memref<4x8xf32, #tpu.memory_space<smem>>
    %133 = vector.broadcast %132 : f32 to vector<1x128xf32>
    %134 = arith.mulf %123, %133 : vector<1x128xf32>
    %135 = arith.addf %117, %134 : vector<1x128xf32>
    %c3_78 = arith.constant 3 : index
    %c7_79 = arith.constant 7 : index
    %136 = memref.load %arg1[%c3_78, %c7_79] : memref<4x8xf32, #tpu.memory_space<smem>>
    %137 = vector.broadcast %136 : f32 to vector<1x128xf32>
    %138 = arith.mulf %123, %137 : vector<1x128xf32>
    %139 = arith.addf %121, %138 : vector<1x128xf32>
    %c0_80 = arith.constant 0 : index
    %140 = memref.load %arg2[%c0_80] : memref<4xf32, #tpu.memory_space<smem>>
    %141 = vector.broadcast %140 : f32 to vector<1x128xf32>
    %142 = arith.addf %127, %141 : vector<1x128xf32>
    %143 = math.tanh %142 : vector<1x128xf32>
    %c1_81 = arith.constant 1 : index
    %144 = memref.load %arg2[%c1_81] : memref<4xf32, #tpu.memory_space<smem>>
    %145 = vector.broadcast %144 : f32 to vector<1x128xf32>
    %146 = arith.addf %131, %145 : vector<1x128xf32>
    %147 = math.tanh %146 : vector<1x128xf32>
    %c2_82 = arith.constant 2 : index
    %148 = memref.load %arg2[%c2_82] : memref<4xf32, #tpu.memory_space<smem>>
    %149 = vector.broadcast %148 : f32 to vector<1x128xf32>
    %150 = arith.addf %135, %149 : vector<1x128xf32>
    %151 = math.tanh %150 : vector<1x128xf32>
    %c3_83 = arith.constant 3 : index
    %152 = memref.load %arg2[%c3_83] : memref<4xf32, #tpu.memory_space<smem>>
    %153 = vector.broadcast %152 : f32 to vector<1x128xf32>
    %154 = arith.addf %139, %153 : vector<1x128xf32>
    %155 = math.tanh %154 : vector<1x128xf32>
    %c0_84 = arith.constant 0 : index
    %c0_85 = arith.constant 0 : index
    %156 = memref.load %arg3[%c0_84, %c0_85] : memref<2x4xf32, #tpu.memory_space<smem>>
    %157 = vector.broadcast %156 : f32 to vector<1x128xf32>
    %158 = arith.mulf %143, %157 : vector<1x128xf32>
    %c0_86 = arith.constant 0 : index
    %c1_87 = arith.constant 1 : index
    %159 = memref.load %arg3[%c0_86, %c1_87] : memref<2x4xf32, #tpu.memory_space<smem>>
    %160 = vector.broadcast %159 : f32 to vector<1x128xf32>
    %161 = arith.mulf %147, %160 : vector<1x128xf32>
    %162 = arith.addf %158, %161 : vector<1x128xf32>
    %c0_88 = arith.constant 0 : index
    %c2_89 = arith.constant 2 : index
    %163 = memref.load %arg3[%c0_88, %c2_89] : memref<2x4xf32, #tpu.memory_space<smem>>
    %164 = vector.broadcast %163 : f32 to vector<1x128xf32>
    %165 = arith.mulf %151, %164 : vector<1x128xf32>
    %166 = arith.addf %162, %165 : vector<1x128xf32>
    %c0_90 = arith.constant 0 : index
    %c3_91 = arith.constant 3 : index
    %167 = memref.load %arg3[%c0_90, %c3_91] : memref<2x4xf32, #tpu.memory_space<smem>>
    %168 = vector.broadcast %167 : f32 to vector<1x128xf32>
    %169 = arith.mulf %155, %168 : vector<1x128xf32>
    %170 = arith.addf %166, %169 : vector<1x128xf32>
    %c0_92 = arith.constant 0 : index
    %171 = memref.load %arg4[%c0_92] : memref<2xf32, #tpu.memory_space<smem>>
    %172 = vector.broadcast %171 : f32 to vector<1x128xf32>
    %173 = arith.addf %170, %172 : vector<1x128xf32>
    %174 = math.tanh %173 : vector<1x128xf32>
    %c0_93 = arith.constant 0 : index
    %c0_94 = arith.constant 0 : index
    %c0_95 = arith.constant 0 : index
    %175 = vector.load %arg6[%c0_93, %c0_94, %c0_95] : memref<2x1x128xf32, #tpu.memory_space<vmem>>, vector<1x1x128xf32>
    %176 = vector.shape_cast %175 : vector<1x1x128xf32> to vector<1x128xf32>
    %177 = vector.shape_cast %174 : vector<1x128xf32> to vector<1x1x128xf32>
    tpu.vector_store %arg6[%c0_93, %c0_94, %c0_95], %177 {strides = array<i32>} : memref<2x1x128xf32, #tpu.memory_space<vmem>>, vector<1x1x128xf32>,
    %c1_96 = arith.constant 1 : index
    %c0_97 = arith.constant 0 : index
    %178 = memref.load %arg3[%c1_96, %c0_97] : memref<2x4xf32, #tpu.memory_space<smem>>
    %179 = vector.broadcast %178 : f32 to vector<1x128xf32>
    %180 = arith.mulf %143, %179 : vector<1x128xf32>
    %c1_98 = arith.constant 1 : index
    %c1_99 = arith.constant 1 : index
    %181 = memref.load %arg3[%c1_98, %c1_99] : memref<2x4xf32, #tpu.memory_space<smem>>
    %182 = vector.broadcast %181 : f32 to vector<1x128xf32>
    %183 = arith.mulf %147, %182 : vector<1x128xf32>
    %184 = arith.addf %180, %183 : vector<1x128xf32>
    %c1_100 = arith.constant 1 : index
    %c2_101 = arith.constant 2 : index
    %185 = memref.load %arg3[%c1_100, %c2_101] : memref<2x4xf32, #tpu.memory_space<smem>>
    %186 = vector.broadcast %185 : f32 to vector<1x128xf32>
    %187 = arith.mulf %151, %186 : vector<1x128xf32>
    %188 = arith.addf %184, %187 : vector<1x128xf32>
    %c1_102 = arith.constant 1 : index
    %c3_103 = arith.constant 3 : index
    %189 = memref.load %arg3[%c1_102, %c3_103] : memref<2x4xf32, #tpu.memory_space<smem>>
    %190 = vector.broadcast %189 : f32 to vector<1x128xf32>
    %191 = arith.mulf %155, %190 : vector<1x128xf32>
    %192 = arith.addf %188, %191 : vector<1x128xf32>
    %c1_104 = arith.constant 1 : index
    %193 = memref.load %arg4[%c1_104] : memref<2xf32, #tpu.memory_space<smem>>
    %194 = vector.broadcast %193 : f32 to vector<1x128xf32>
    %195 = arith.addf %192, %194 : vector<1x128xf32>
    %196 = math.tanh %195 : vector<1x128xf32>
    %c1_105 = arith.constant 1 : index
    %c0_106 = arith.constant 0 : index
    %c0_107 = arith.constant 0 : index
    %197 = vector.load %arg6[%c1_105, %c0_106, %c0_107] : memref<2x1x128xf32, #tpu.memory_space<vmem>>, vector<1x1x128xf32>
    %198 = vector.shape_cast %197 : vector<1x1x128xf32> to vector<1x128xf32>
    %199 = vector.shape_cast %196 : vector<1x128xf32> to vector<1x1x128xf32>
    tpu.vector_store %arg6[%c1_105, %c0_106, %c0_107], %199 {strides = array<i32>} : memref<2x1x128xf32, #tpu.memory_space<vmem>>, vector<1x1x128xf32>,
    return
  }
  func.func @transform_0(%arg0: i32) -> (i32, i32) {
    %c0_i32 = arith.constant 0 : i32
    %c0_i32_0 = arith.constant 0 : i32
    %c0_i32_1 = arith.constant 0 : i32
    return %c0_i32, %c0_i32_0 : i32, i32
  }
  func.func @transform_1(%arg0: i32) -> i32 {
    %c0_i32 = arith.constant 0 : i32
    %c0_i32_0 = arith.constant 0 : i32
    return %c0_i32 : i32
  }
  func.func @transform_2(%arg0: i32) -> (i32, i32) {
    %c0_i32 = arith.constant 0 : i32
    %c0_i32_0 = arith.constant 0 : i32
    %c0_i32_1 = arith.constant 0 : i32
    return %c0_i32, %c0_i32_0 : i32, i32
  }
  func.func @transform_3(%arg0: i32) -> i32 {
    %c0_i32 = arith.constant 0 : i32
    %c0_i32_0 = arith.constant 0 : i32
    return %c0_i32 : i32
  }
  func.func @transform_4(%arg0: i32) -> (i32, i32, i32) {
    %c0_i32 = arith.constant 0 : i32
    %c0_i32_0 = arith.constant 0 : i32
    %c0_i32_1 = arith.constant 0 : i32
    return %c0_i32, %arg0, %c0_i32_0 : i32, i32, i32
  }
  func.func @transform_5(%arg0: i32) -> (i32, i32, i32) {
    %c0_i32 = arith.constant 0 : i32
    %c0_i32_0 = arith.constant 0 : i32
    %c0_i32_1 = arith.constant 0 : i32
    return %c0_i32, %arg0, %c0_i32_0 : i32, i32, i32
  }
}

</mosaic_0001>

<bundles_post_ra>
// kernel: tpu_custom_call.1
= control target key start
LH: loop header
LB: loop body
LE: loop exit
PB: predicated region body
PF: predicated region fallthrough
CT: control target
= control target key end

     0   :  { %10 = vsyncpa [#allocation4], 0  ;;  %s604_s0 = inlined_call_operand.hbm [shape: f32[4,8], index: 0, kind: input, shape index: {}]   ;;  %s605_s1 = inlined_call_operand.vmem [shape: f32[4], index: 1, kind: input, shape index: {}]   ;;  %s606_s2 = inlined_call_operand.vmem [shape: f32[2,4], index: 2, kind: input, shape index: {}]   ;;  %s607_s3 = inlined_call_operand.vmem [shape: f32[2], index: 3, kind: input, shape index: {}]   ;;  %s608_s4 = inlined_call_operand.vmem [shape: f32[8,1,128], index: 4, kind: input, shape index: {}]   ;;  %s609_s5 = inlined_call_operand.hbm [shape: f32[2,1,128], index: 5, kind: output, shape index: {}]  }
   0x1   :  { %11 = vsyncpa [#allocation5], 0 }
   0x2   :  { %12 = vsyncpa [#allocation8], 0  ;;  %s38_s20 = sshll.u32 %s606_s2, 4  ;;  %s39_s20 = int_to_ptr.vmem [resolvable:$true] %s38_s20 }
   0x3   :  { %13 = vsyncpa [#allocation3], 0  ;;  %s350_s21 = scalar_lea.vmem %s39_s20, 32  ;;  %p355_p1 = scmp.lt.s32.totalorder %s39_s20, %s39_s20 }
   0x4   :  { %p351_p0 = scmp.ne.s32.totalorder %s39_s20, %s350_s21  ;;  %p356_p2 = scmp.lt.s32.totalorder %s350_s21, %s350_s21 }
   0x6   :  { %p357_p3 = por %p356_p2, %p355_p1 }
   0x8   :  { %p358_p4 = pnand %p357_p3, %p351_p0 }
   0xa   :  { %361 = shalt.err (!%p358_p4)
}
   0xb   :  { %s426_s22 = smov [#allocation7]   ;;  %s362_s25 = scalar_lea.hbm %s604_s0, 64 }
   0xc   :  { %41 = dma.vmem_to_smem %s39_s20, 32, %s426_s22, [#allocation8]  }
   0xd   :  { %p363_p5 = scmp.ne.s32.totalorder %s604_s0, %s362_s25  ;;  %p366_p6 = scmp.lt.u32.totalorder %s362_s25, %s604_s0 }
   0xf   :  { %p368_p7 = pnand %p366_p6, %p363_p5 }
  0x11   :  { %371 = shalt.err (!%p368_p7)
}
  0x12   :  { %s427_s29 = smov [#allocation2]   ;;  %s28_s9 = sshll.u32 %s605_s1, 4  ;;  %s29_s9 = int_to_ptr.vmem [resolvable:$true] %s28_s9 }
  0x13   :  { %21 = dma.hbm_to_smem %s604_s0, 64, %s427_s29, [#allocation4]  }
  0x14   :  { %s48_s12 = sshll.u32 %s607_s3, 4  ;;  %s372_s13 = scalar_lea.vmem %s29_s9, 16  ;;  %s49_s12 = int_to_ptr.vmem [resolvable:$true] %s48_s12 }
  0x15   :  { %p373_p8 = scmp.ne.s32.totalorder %s29_s9, %s372_s13  ;;  %p377_p9 = scmp.lt.s32.totalorder %s29_s9, %s29_s9 }
  0x16   :  { %p378_p10 = scmp.lt.s32.totalorder %s372_s13, %s372_s13 }
  0x18   :  { %p379_p11 = por %p378_p10, %p377_p9 }
  0x1a   :  { %p380_p12 = pnand %p379_p11, %p373_p8 }
  0x1c   :  { %383 = shalt.err (!%p380_p12)
}
  0x1d   :  { %s428_s14 = smov [#allocation6]   ;;  %s384_s0 = scalar_lea.vmem %s49_s12, 16 }
  0x1e   :  { %31 = dma.vmem_to_smem %s29_s9, 16, %s428_s14, [#allocation5]  }
  0x1f   :  { %p385_p13 = scmp.ne.s32.totalorder %s49_s12, %s384_s0  ;;  %p389_p0 = scmp.lt.s32.totalorder %s49_s12, %s49_s12 }
  0x20   :  { %p390_p1 = scmp.lt.s32.totalorder %s384_s0, %s384_s0 }
  0x22   :  { %p391_p2 = por %p390_p1, %p389_p0 }
  0x24   :  { %p392_p3 = pnand %p391_p2, %p385_p13 }
  0x26   :  { %395 = shalt.err (!%p392_p3)
}
  0x27   :  { %s429_s1 = smov [#allocation9]  }
  0x28   :  { %51 = dma.vmem_to_smem %s49_s12, 16, %s429_s1, [#allocation8]  }
  0x29   :  { %418 = dma.done.wait [#allocation4], 64  }
  0x2a   :  { %419 = vsyncadd [#allocation4], 4294967232 }
  0x2b   :  { %420 = dma.done.wait [#allocation5], 16  }
  0x2c   :  { %421 = vsyncadd [#allocation5], 4294967280 }
  0x2d   :  { %422 = dma.done.wait [#allocation8], 48  }
  0x2e   :  { %423 = vsyncadd [#allocation8], 4294967248 }
  0x2f   :  { %66 = sfence }
  0x30   :  { %s68_s3 = sld [smem:[#allocation2]]  ;;  %s286_s18 = sld [smem:[#allocation2 + $0x1]]  ;;  %v67_v0 = vld [vmem:[%s608_s4] sm:$0x1]  ;;  %v285_v3 = vld [vmem:[%s608_s4 + $0x1] sm:$0x1] }
  0x31   :  { %s282_s15 = sld [smem:[#allocation2 + $0x80]]  ;;  %s287_s19 = sld [smem:[#allocation2 + $0x81]]  ;;  %v290_v12 = vld [vmem:[%s608_s4 + $0x2] sm:$0x1]  ;;  %v295_v29 = vld [vmem:[%s608_s4 + $0x3] sm:$0x1] }
  0x32   :  { %s283_s16 = sld [smem:[#allocation2 + $0x100]]  ;;  %s288_s20 = sld [smem:[#allocation2 + $0x101]]  ;;  %v300_v34 = vld [vmem:[%s608_s4 + $0x4] sm:$0x1]  ;;  %v305_v55 = vld [vmem:[%s608_s4 + $0x5] sm:$0x1] }
  0x33   :  { %s284_s17 = sld [smem:[#allocation2 + $0x180]]  ;;  %s289_s21 = sld [smem:[#allocation2 + $0x181]]  ;;  %v310_v60 = vld [vmem:[%s608_s4 + $0x6] sm:$0x1] }
  0x34   :  { %s487_s24 = sld [smem:[#allocation2 + $0x2]]  ;;  %s498_s29 = sld [smem:[#allocation2 + $0x3]] }
  0x35   :  { %s489_s25 = sld [smem:[#allocation2 + $0x82]]  ;;  %s500_s30 = sld [smem:[#allocation2 + $0x83]] }
  0x36   :  { %s491_s26 = sld [smem:[#allocation2 + $0x102]]  ;;  %v69_v1 = vstv %s68_s3  ;;  %s502_s6 = sld [smem:[#allocation2 + $0x103]]  ;;  %v83_v10 = vstv %s286_s18 }
  0x37   :  { %s493_s27 = sld [smem:[#allocation2 + $0x182]]  ;;  %v72_v2 = vstv %s282_s15  ;;  %v70_v4 = vmul.f32 %v69_v1, %v67_v0  ;;  %s504_s7 = sld [smem:[#allocation2 + $0x183]]  ;;  %v87_v11 = vstv %s287_s19  ;;  %v84_v13 = vmul.f32 %v285_v3, %v83_v10 }
  0x38   :  { %v73_v5 = vmul.f32 %v72_v2, %v67_v0  ;;  %v75_v6 = vstv %s283_s16  ;;  %s509_s10 = sld [smem:[#allocation2 + $0x4]]  ;;  %v88_v14 = vmul.f32 %v285_v3, %v87_v11  ;;  %v91_v15 = vstv %s288_s20  ;;  %s519_s14 = sld [smem:[#allocation2 + $0x5]] }
  0x39   :  { %v78_v7 = vstv %s284_s17  ;;  %v76_v8 = vmul.f32 %v75_v6, %v67_v0  ;;  %s511_s11 = sld [smem:[#allocation2 + $0x84]]  ;;  %v95_v16 = vstv %s289_s21  ;;  %v92_v17 = vmul.f32 %v285_v3, %v91_v15  ;;  %s521_s0 = sld [smem:[#allocation2 + $0x85]] }
  0x3a   :  { %v79_v9 = vmul.f32 %v78_v7, %v67_v0  ;;  %v96_v18 = vmul.f32 %v285_v3, %v95_v16  ;;  %v101_v19 = vstv %s487_s24  ;;  %s515_s12 = sld [smem:[#allocation2 + $0x104]]  ;;  %v85_v21 = vadd.f32 %v84_v13, %v70_v4  ;;  %s528_s15 = sld [smem:[#allocation2 + $0x105]] }
  0x3b   :  { %v105_v20 = vstv %s489_s25  ;;  %s517_s13 = sld [smem:[#allocation2 + $0x184]]  ;;  %v89_v22 = vadd.f32 %v88_v14, %v73_v5  ;;  %v102_v23 = vmul.f32 %v290_v12, %v101_v19  ;;  %v93_v25 = vadd.f32 %v92_v17, %v76_v8  ;;  %s530_s16 = sld [smem:[#allocation2 + $0x185]]  ;;  %v315_v17 = vld [vmem:[%s608_s4 + $0x7] sm:$0x1] }
  0x3c   :  { %v106_v24 = vmul.f32 %v290_v12, %v105_v20  ;;  %v97_v26 = vadd.f32 %v96_v18, %v79_v9  ;;  %v109_v27 = vstv %s491_s26  ;;  %v119_v35 = vstv %s498_s29  ;;  %s539_s19 = sld [smem:[#allocation2 + $0x6]]  ;;  %s549_s23 = sld [smem:[#allocation2 + $0x7]] }
  0x3d   :  { %v113_v28 = vstv %s493_s27  ;;  %v103_v30 = vadd.f32 %v102_v23, %v85_v21  ;;  %v110_v32 = vmul.f32 %v290_v12, %v109_v27  ;;  %v123_v36 = vstv %s500_s30  ;;  %s541_s20 = sld [smem:[#allocation2 + $0x86]]  ;;  %s551_s24 = sld [smem:[#allocation2 + $0x87]] }
  0x3e   :  { %v107_v31 = vadd.f32 %v106_v24, %v89_v22  ;;  %v114_v33 = vmul.f32 %v290_v12, %v113_v28  ;;  %v127_v37 = vstv %s502_s6  ;;  %v131_v38 = vstv %s504_s7  ;;  %s545_s21 = sld [smem:[#allocation2 + $0x106]]  ;;  %s558_s27 = sld [smem:[#allocation2 + $0x107]] }
  0x3f   :  { %v111_v39 = vadd.f32 %v110_v32, %v93_v25  ;;  %v120_v41 = vmul.f32 %v295_v29, %v119_v35  ;;  %v124_v42 = vmul.f32 %v295_v29, %v123_v36  ;;  %v128_v43 = vmul.f32 %v295_v29, %v127_v37  ;;  %s547_s22 = sld [smem:[#allocation2 + $0x186]]  ;;  %s560_s2 = sld [smem:[#allocation2 + $0x187]] }
  0x40   :  { %v115_v40 = vadd.f32 %v114_v33, %v97_v26  ;;  %v132_v44 = vmul.f32 %v295_v29, %v131_v38  ;;  %v137_v45 = vstv %s509_s10  ;;  %v141_v46 = vstv %s511_s11  ;;  %s569_s30 = sld [smem:[#allocation6]]  ;;  %s571_s6 = sld [smem:[#allocation6 + $0x1]] }
  0x41   :  { %v121_v47 = vadd.f32 %v120_v41, %v103_v30  ;;  %v125_v48 = vadd.f32 %v124_v42, %v107_v31  ;;  %v138_v49 = vmul.f32 %v300_v34, %v137_v45  ;;  %v142_v50 = vmul.f32 %v300_v34, %v141_v46  ;;  %s573_s7 = sld [smem:[#allocation6 + $0x2]]  ;;  %s575_s8 = sld [smem:[#allocation6 + $0x3]] }
  0x42   :  { %v129_v51 = vadd.f32 %v128_v43, %v111_v39  ;;  %v133_v52 = vadd.f32 %v132_v44, %v115_v40  ;;  %v145_v53 = vstv %s515_s12  ;;  %v149_v54 = vstv %s517_s13  ;;  %s222_s4 = sld [smem:[#allocation7]]  ;;  %s323_s12 = sld [smem:[#allocation7 + $0x1]] }
  0x43   :  { %v139_v56 = vadd.f32 %v138_v49, %v121_v47  ;;  %v143_v57 = vadd.f32 %v142_v50, %v125_v48  ;;  %v146_v58 = vmul.f32 %v300_v34, %v145_v53  ;;  %v150_v59 = vmul.f32 %v300_v34, %v149_v54  ;;  %s326_s11 = sld [smem:[#allocation7 + $0x80]]  ;;  %s327_s13 = sld [smem:[#allocation7 + $0x81]] }
  0x44   :  { %v155_v61 = vstv %s519_s14  ;;  %v159_v62 = vstv %s521_s0  ;;  %v163_v63 = vstv %s528_s15  ;;  %v167_v0 = vstv %s530_s16  ;;  %s324_s14 = sld [smem:[#allocation7 + $0x2]]  ;;  %s325_s1 = sld [smem:[#allocation7 + $0x3]] }
  0x45   :  { %v147_v1 = vadd.f32 %v146_v58, %v129_v51  ;;  %v151_v2 = vadd.f32 %v150_v59, %v133_v52  ;;  %v156_v3 = vmul.f32 %v305_v55, %v155_v61  ;;  %v160_v4 = vmul.f32 %v305_v55, %v159_v62  ;;  %s328_s0 = sld [smem:[#allocation7 + $0x82]]  ;;  %s329_s3 = sld [smem:[#allocation7 + $0x83]] }
  0x46   :  { %v164_v5 = vmul.f32 %v305_v55, %v163_v63  ;;  %v168_v6 = vmul.f32 %v305_v55, %v167_v0  ;;  %v173_v7 = vstv %s539_s19  ;;  %v177_v8 = vstv %s541_s20  ;;  %s237_s15 = sld [smem:[#allocation9]]  ;;  %s330_s16 = sld [smem:[#allocation9 + $0x1]] }
  0x47   :  { %v157_v9 = vadd.f32 %v156_v3, %v139_v56  ;;  %v161_v10 = vadd.f32 %v160_v4, %v143_v57  ;;  %v174_v11 = vmul.f32 %v310_v60, %v173_v7  ;;  %v178_v12 = vmul.f32 %v310_v60, %v177_v8  ;;  %s430_s17 = smov [#allocation10]  }
  0x48   :  { %v165_v13 = vadd.f32 %v164_v5, %v147_v1  ;;  %v169_v14 = vadd.f32 %v168_v6, %v151_v2  ;;  %v181_v15 = vstv %s545_s21  ;;  %v185_v16 = vstv %s547_s22  ;;  %s268_s18 = sshll.u32 %s430_s17, 4  ;;  %s269_s18 = int_to_ptr.vmem [resolvable:$true] %s268_s18 }
  0x49   :  { %v175_v18 = vadd.f32 %v174_v11, %v157_v9  ;;  %v179_v19 = vadd.f32 %v178_v12, %v161_v10  ;;  %v182_v20 = vmul.f32 %v310_v60, %v181_v15  ;;  %v186_v21 = vmul.f32 %v310_v60, %v185_v16  ;;  %s396_s19 = scalar_lea.vmem %s269_s18, 32  ;;  %p401_p5 = scmp.lt.s32.totalorder %s269_s18, %s269_s18 }
  0x4a   :  { %v191_v22 = vstv %s549_s23  ;;  %v195_v23 = vstv %s551_s24  ;;  %v199_v24 = vstv %s558_s27  ;;  %v203_v25 = vstv %s560_s2  ;;  %p397_p4 = scmp.ne.s32.totalorder %s269_s18, %s396_s19  ;;  %p402_p6 = scmp.lt.s32.totalorder %s396_s19, %s396_s19 }
  0x4b   :  { %v183_v26 = vadd.f32 %v182_v20, %v165_v13  ;;  %v187_v27 = vadd.f32 %v186_v21, %v169_v14  ;;  %v192_v28 = vmul.f32 %v315_v17, %v191_v22  ;;  %v196_v29 = vmul.f32 %v315_v17, %v195_v23 }
  0x4c   :  { %v200_v30 = vmul.f32 %v315_v17, %v199_v24  ;;  %v204_v31 = vmul.f32 %v315_v17, %v203_v25  ;;  %v207_v32 = vstv %s569_s30  ;;  %v211_v33 = vstv %s571_s6  ;;  %p403_p7 = por %p402_p6, %p401_p5 }
  0x4d   :  { %v193_v34 = vadd.f32 %v192_v28, %v175_v18  ;;  %v197_v35 = vadd.f32 %v196_v29, %v179_v19  ;;  %v215_v36 = vstv %s573_s7  ;;  %v219_v37 = vstv %s575_s8 }
  0x4e   :  { %v201_v38 = vadd.f32 %v200_v30, %v183_v26  ;;  %v205_v39 = vadd.f32 %v204_v31, %v187_v27  ;;  %v223_v44 = vstv %s222_s4  ;;  %v243_v45 = vstv %s326_s11  ;;  %p404_p8 = pnand %p403_p7, %p397_p4 }
  0x4f   :  { %v208_v40 = vadd.f32 %v207_v32, %v193_v34  ;;  %v212_v41 = vadd.f32 %v211_v33, %v197_v35  ;;  %v226_v46 = vstv %s323_s12  ;;  %v246_v47 = vstv %s327_s13 }
  0x50   :  { %v216_v42 = vadd.f32 %v215_v36, %v201_v38  ;;  %v220_v43 = vadd.f32 %v219_v37, %v205_v39  ;;  %v230_v49 = vstv %s324_s14  ;;  %v250_v50 = vstv %s328_s0 }
  0x51   :  { %338 = vtanh.f32 %v208_v40  ;;  %v234_v53 = vstv %s325_s1  ;;  %v254_v55 = vstv %s329_s3  ;;  %v238_v4 = vstv %s237_s15 }
  0x52   :  { %340 = vtanh.f32 %v212_v41  ;;  %v258_v5 = vstv %s330_s16 }
  0x53   :  { %342 = vtanh.f32 %v216_v42 }
  0x54   :  { %344 = vtanh.f32 %v220_v43 }
  0x5b   :  { %v339_v48 = vpop.eup %338 }
  0x5c   :  { %v341_v51 = vpop.eup %340  ;;  %v224_v52 = vmul.f32 %v339_v48, %v223_v44  ;;  %v244_v54 = vmul.f32 %v339_v48, %v243_v45 }
  0x5d   :  { %v343_v56 = vpop.eup %342  ;;  %v227_v57 = vmul.f32 %v341_v51, %v226_v46  ;;  %v247_v58 = vmul.f32 %v341_v51, %v246_v47 }
  0x5e   :  { %v345_v59 = vpop.eup %344  ;;  %v231_v60 = vmul.f32 %v343_v56, %v230_v49  ;;  %v251_v61 = vmul.f32 %v343_v56, %v250_v50 }
  0x5f   :  { %v228_v62 = vadd.f32 %v227_v57, %v224_v52  ;;  %v235_v63 = vmul.f32 %v345_v59, %v234_v53  ;;  %v248_v0 = vadd.f32 %v247_v58, %v244_v54  ;;  %v255_v1 = vmul.f32 %v345_v59, %v254_v55 }
  0x61   :  { %v232_v2 = vadd.f32 %v231_v60, %v228_v62  ;;  %v252_v3 = vadd.f32 %v251_v61, %v248_v0 }
  0x63   :  { %v236_v6 = vadd.f32 %v235_v63, %v232_v2  ;;  %v256_v7 = vadd.f32 %v255_v1, %v252_v3 }
  0x65   :  { %v239_v8 = vadd.f32 %v238_v4, %v236_v6  ;;  %v259_v9 = vadd.f32 %v258_v5, %v256_v7 }
  0x67   :  { %346 = vtanh.f32 %v239_v8 }
  0x68   :  { %348 = vtanh.f32 %v259_v9 }
  0x71   :  { %v347_v10 = vpop.eup %346 }
  0x72   :  { %v349_v11 = vpop.eup %348  ;;  %241 = vst [vmem:[#allocation10] sm:$0x1] %v347_v10 }
  0x73   :  { %262 = vst [vmem:[#allocation10 + $0x1] sm:$0x1] %v349_v11 }
  0x74   :  { %407 = shalt.err (!%p404_p8)
}
  0x75   :  { %s408_s22 = scalar_lea.hbm %s609_s5, 32 }
  0x76   :  { %p409_p9 = scmp.ne.s32.totalorder %s609_s5, %s408_s22  ;;  %p412_p10 = scmp.lt.u32.totalorder %s408_s22, %s609_s5 }
  0x78   :  { %p414_p11 = pnand %p412_p10, %p409_p9 }
  0x7a   :  { %417 = shalt.err (!%p414_p11)
}
  0x7b   :  { %s431_s27 = smov 16   ;;  %s432_s2 = smov 1  }
  0x7c   :  { %274 = dma.vmem_to_hbm [thread:$0]  %s269_s18, 32, %s609_s5, [#allocation3], %s431_s27, %s431_s27, %s432_s2  }
  0x7d   :  { %424 = dma.done.wait [#allocation3], 32  }
  0x7e   :  { %425 = vsyncadd [#allocation3], 4294967264 }
  0x7f   :  { %278 = vsyncpa [#allocation3], 1 }
  0x80   :  { %279 = vsyncpa [#allocation4], 1 }
  0x81   :  { %280 = vsyncpa [#allocation5], 1 }
  0x82   :  { %281 = vsyncpa [#allocation8], 1 }

</bundles_post_ra>
